<compile_context>
chip_gen: v6e
topology: v6e:2x2x1
jax: 0.10.0
libtpu: 0.0.40
codegen_flags: <defaults>
</compile_context>

<pallas_src>
import functools

import jax
import jax.numpy as jnp
import numpy as np
from jax.experimental import pallas as pl
from jax.experimental.pallas import tpu as pltpu

# Hyper-parameters of the torch module (no trainable parameters: train_c=False).
HYP_C = 0.1
CLIP_R = 2.3
MRG = 0.1          # unused in forward (kept for parity with the torch module)
TAU = 0.1          # unused in forward
SMOOTHING = 0.1
MIN_NORM = 1e-15
BALL_EPS_F32 = 4e-3


def _round_up(x, m):
    return ((x + m - 1) // m) * m


# ----------------------------- plain-JAX glue -----------------------------------------
def to_poincare(x, c=HYP_C, clip_r=CLIP_R):
    """hypnn.ToPoincare forward: feature clipping -> expmap0 -> project."""
    x_norm = jnp.linalg.norm(x, axis=-1, keepdims=True) + 1e-5
    x = x * jnp.minimum(1.0, clip_r / x_norm)
    sqrt_c = jnp.sqrt(c)
    u_norm = jnp.maximum(jnp.linalg.norm(x, axis=-1, keepdims=True), MIN_NORM)
    g = jnp.tanh(sqrt_c * u_norm) * x / (sqrt_c * u_norm)
    g_norm = jnp.maximum(jnp.linalg.norm(g, axis=-1, keepdims=True), MIN_NORM)
    maxnorm = (1.0 - BALL_EPS_F32) / sqrt_c
    return jnp.where(g_norm > maxnorm, g / g_norm * maxnorm, g)


def compute_centers_hyp(x, labels, num_clusters, c=HYP_C):
    """Vectorized equivalent of the per-unique-label poincare_mean loop (Einstein
    midpoint).  Clusters with no samples keep a zero center (as in the torch code)."""
    xk = 2.0 * x / (1.0 + c * jnp.sum(x * x, axis=-1, keepdims=True))          # Poincare->Klein
    lamb = 1.0 / jnp.sqrt(1.0 - c * jnp.sum(xk * xk, axis=-1, keepdims=True))  # (B, 1)
    onehot = jax.nn.one_hot(labels, num_clusters, dtype=x.dtype)               # (B, C)
    num = onehot.T @ (lamb * xk)                                               # (C, D)
    den = onehot.T @ lamb                                                      # (C, 1)
    present = den > 0
    mean_k = jnp.where(present, num / jnp.where(present, den, 1.0), 0.0)
    centers = mean_k / (1.0 + jnp.sqrt(jnp.maximum(
        1.0 - c * jnp.sum(mean_k * mean_k, axis=-1, keepdims=True), 0.0)))     # Klein->Poincare
    return jnp.where(present, centers, 0.0)


def smooth_labels(labels, num_clusters, smoothing=SMOOTHING):
    """Reference-only: binarize_and_smooth_labels (label_binarize -> one-hot)."""
    onehot = jax.nn.one_hot(labels, num_clusters, dtype=jnp.float32)
    return jnp.where(onehot > 0, 1.0 - smoothing,
                     smoothing / max(num_clusters - 1, 1))


# ----------------------------- Pallas kernel -------------------------------------------
def _hier_proxy_kernel(z_ref, c_ref, y2_ref, lab_ref, o_ref, *,
                       hyp_c, num_clusters, smoothing):
    # z_ref: (TB, D) hyperbolic embeddings; c_ref: (Cp, D) centers (C padded to 128s);
    # y2_ref: (1, Cp) squared norms of centers; lab_ref: (TB, 1) int32 labels;
    # o_ref: (1, TB) lane-dense per-row loss.
    x = z_ref[...].astype(jnp.float32)
    y = c_ref[...].astype(jnp.float32)
    y2 = y2_ref[...].astype(jnp.float32)          # (1, Cp)
    lab = lab_ref[...]                            # (TB, 1) int32

    c = jnp.float32(hyp_c)
    sqrt_c = jnp.sqrt(c)

    # <x, y_k> on the MXU (contract the embedding dim of both operands).  Kept in f32:
    # the analytic ||mobius_add||^2 expansion below is cancellation-prone.
    xy = jax.lax.dot_general(x, y, (((1,), (1,)), ((), ())),
                             preferred_element_type=jnp.float32)   # (TB, Cp)
    x2 = jnp.sum(x * x, axis=-1, keepdims=True)                    # (TB, 1)

    # mobius_addition_batch(-x, y):  num = alpha * (-x) + beta * y
    xy_n = -xy
    alpha = 1.0 + 2.0 * c * xy_n + c * y2                          # (TB, Cp)
    beta = 1.0 - c * x2                                            # (TB, 1)
    # ||num||^2 expanded analytically (never materializes the B x C x D tensor)
    num_sq = alpha * alpha * x2 + beta * beta * y2 + 2.0 * alpha * beta * xy_n
    num_norm = jnp.sqrt(jnp.maximum(num_sq, 0.0))
    denom = 1.0 + 2.0 * c * xy_n + (c * c) * x2 * y2
    mob_norm = num_norm / (denom + 1e-5)

    # dist = 2/sqrt(c) * artanh(sqrt(c)*||.||), artanh clamped as in hyptorch.
    # Single log instead of two log1p calls (EUP slot relief).
    arg = jnp.clip(sqrt_c * mob_norm, -1.0 + 1e-5, 1.0 - 1e-5)
    dist = (1.0 / sqrt_c) * jnp.log((1.0 + arg) / (1.0 - arg))     # (TB, Cp)

    # In-kernel label smoothing + padded-column masking.
    col = jax.lax.broadcasted_iota(jnp.int32, dist.shape, 1)       # (TB, Cp)
    valid = col < num_clusters
    logits = jnp.where(valid, -dist, jnp.float32(-1e30))
    off_val = jnp.float32(smoothing / max(num_clusters - 1, 1))
    t = jnp.where(col == lab, jnp.float32(1.0 - smoothing),
                  jnp.where(valid, off_val, jnp.float32(0.0)))

    # loss_row = sum(-T * log_softmax(logits, -1), -1)
    m = jnp.max(logits, axis=-1, keepdims=True)
    lse = m + jnp.log(jnp.sum(jnp.exp(logits - m), axis=-1, keepdims=True))
    nll = -t * (logits - lse)                                      # (TB, Cp)

    # Lane-dense per-row reduction: ones(1,Cp) . nll^T -> (1, TB) on the MXU,
    # so the output is stored with full-width (unmasked) vector stores.
    ones = jnp.ones((1, nll.shape[1]), jnp.float32)
    o_ref[...] = jax.lax.dot_general(ones, nll, (((1,), (1,)), ((), ())),
                                     preferred_element_type=jnp.float32)


def _pick_vmem_limit():
    try:
        cap = pltpu.get_tpu_info().vmem_capacity_bytes
    except Exception:
        cap = 64 * 1024 * 1024
    return int(max(32 * 1024 * 1024, min(int(0.75 * cap), 96 * 1024 * 1024)))


def hier_proxy_loss_rows(z_hyp, centers, labels, num_clusters,
                         hyp_c=HYP_C, smoothing=SMOOTHING, block_rows=256):
    """Per-sample HIERPROXY loss, returned as a (B,) vector."""
    B, D = z_hyp.shape
    C = centers.shape[0]
    assert C == num_clusters

    # Pad the class/lane dimension to a multiple of 128 (full-lane VPU/MXU, unmasked
    # vregs).  Padded columns are masked inside the kernel.
    C_pad = _round_up(max(C, 1), 128)

    # Row tile: one big tile for small batches (rounded to a sublane multiple),
    # otherwise `block_rows` (kept a multiple of 128 so lane-dense output blocks align).
    if B <= block_rows:
        tb = _round_up(B, 8)
    else:
        tb = _round_up(block_rows, 128)
    B_pad = _round_up(B, tb)

    z_pad = jnp.zeros((B_pad, D), jnp.float32).at[:B].set(z_hyp.astype(jnp.float32))
    c_pad = jnp.zeros((C_pad, D), jnp.float32).at[:C].set(centers.astype(jnp.float32))
    y2_pad = jnp.sum(c_pad * c_pad, axis=-1, keepdims=True).T              # (1, C_pad)
    lab_pad = jnp.zeros((B_pad, 1), jnp.int32).at[:B, 0].set(labels.astype(jnp.int32))

    kernel = functools.partial(_hier_proxy_kernel, hyp_c=float(hyp_c),
                               num_clusters=int(num_clusters),
                               smoothing=float(smoothing))

    # TODO(synk): for very large num_clusters (tens of thousands) on v7x (64 MiB VMEM),
    # add a second grid axis tiling C with an online-softmax accumulator.
    loss_lane = pl.pallas_call(
        kernel,
        out_shape=jax.ShapeDtypeStruct((1, B_pad), jnp.float32),
        grid_spec=pltpu.PrefetchScalarGridSpec(
            num_scalar_prefetch=0,
            grid=(B_pad // tb,),
            in_specs=[
                pl.BlockSpec((tb, D), lambda i: (i, 0)),      # z row tile
                pl.BlockSpec((C_pad, D), lambda i: (0, 0)),   # all centers (resident)
                pl.BlockSpec((1, C_pad), lambda i: (0, 0)),   # center sq-norms
                pl.BlockSpec((tb, 1), lambda i: (i, 0)),      # int labels tile
            ],
            out_specs=pl.BlockSpec((1, tb), lambda i: (0, i)),  # lane-dense losses
        ),
        compiler_params=pltpu.CompilerParams(
            dimension_semantics=("parallel",),
            vmem_limit_bytes=_pick_vmem_limit(),
        ),
    )(z_pad, c_pad, y2_pad, lab_pad)

    return loss_lane[0, :B]


def hier_proxy_forward(z_s, labels, num_clusters, sz_embed,
                       hyp_c=HYP_C, clip_r=CLIP_R, smoothing=SMOOTHING):
    """Full HIERPROXYLoss.forward: returns (loss_mean, centers)."""
    del sz_embed  # implied by z_s.shape[-1]
    z_hyp = to_poincare(z_s.astype(jnp.float32), c=hyp_c, clip_r=clip_r)
    centers = compute_centers_hyp(z_hyp, labels, num_clusters, c=hyp_c)
    loss_rows = hier_proxy_loss_rows(z_hyp, centers, labels, num_clusters,
                                     hyp_c=hyp_c, smoothing=smoothing)
    return jnp.mean(loss_rows), centers


# ----------------------------- reference (pure JAX, torch-faithful) ---------------------
def _ref_loss(z_hyp, centers, T, c=HYP_C):
    x = -z_hyp
    xy = x @ centers.T
    x2 = jnp.sum(x * x, -1, keepdims=True)
    y2 = jnp.sum(centers * centers, -1, keepdims=True)
    num = ((1 + 2 * c * xy + c * y2.T)[..., None] * x[:, None, :]
           + (1 - c * x2)[..., None] * centers[None])
    denom = 1 + 2 * c * xy + c * c * x2 * y2.T
    res = num / (denom[..., None] + 1e-5)
    arg = jnp.clip(jnp.sqrt(c) * jnp.linalg.norm(res, axis=-1), -1 + 1e-5, 1 - 1e-5)
    dist = 2 / jnp.sqrt(c) * jnp.arctanh(arg)
    log_sm = jax.nn.log_softmax(-dist, axis=-1)
    return jnp.mean(jnp.sum(-T * log_sm, -1))


if __name__ == "__main__":
    B, D, C = 16, 32, 8   # batch, sz_embed, num_clusters
    key = jax.random.PRNGKey(0)
    k1, k2 = jax.random.split(key)
    z_s = jax.random.normal(k1, (B, D), dtype=jnp.float32)
    labels = jax.random.randint(k2, (B,), 0, C)

    loss, centers = hier_proxy_forward(z_s, labels, num_clusters=C, sz_embed=D)
    loss = jax.block_until_ready(loss)
    centers = jax.block_until_ready(centers)

    # cross-check the kernel against a torch-faithful pure-JAX reference
    z_hyp = to_poincare(z_s)
    T = smooth_labels(labels, C)
    ref = jax.block_until_ready(_ref_loss(z_hyp, centers, T))
    np.testing.assert_allclose(np.asarray(loss), np.asarray(ref), rtol=1e-3, atol=1e-4)

    print("KERNEL_OK")
</pallas_src>

<mosaic_0001>
module attributes {stable_mosaic.version = 11 : i64} {
  func.func @_hier_proxy_kernel(%arg0: i32, %arg1: memref<16x32xf32, #tpu.memory_space<vmem>>, %arg2: memref<128x32xf32, #tpu.memory_space<vmem>>, %arg3: memref<1x128xf32, #tpu.memory_space<vmem>>, %arg4: memref<16x1xi32, #tpu.memory_space<vmem>>, %arg5: memref<1x16xf32, #tpu.memory_space<vmem>>) attributes {dimension_semantics = [#tpu.dimension_semantics<parallel>], iteration_bounds = array<i64: 1>, scalar_prefetch = 0 : i64, scratch_operands = 0 : i64, tpu.core_type = #tpu.core_type<tc>, window_params = [{transform_indices = @transform_0, window_bounds = array<i64: 16, 32>}, {pipeline_mode = #tpu.pipeline_mode<synchronous>, transform_indices = @transform_1, window_bounds = array<i64: 128, 32>}, {pipeline_mode = #tpu.pipeline_mode<synchronous>, transform_indices = @transform_2, window_bounds = array<i64: 1, 128>}, {transform_indices = @transform_3, window_bounds = array<i64: 16, 1>}, {transform_indices = @transform_4, window_bounds = array<i64: 1, 16>}]} {
    %c0 = arith.constant 0 : index
    %c0_0 = arith.constant 0 : index
    %0 = vector.load %arg1[%c0, %c0_0] : memref<16x32xf32, #tpu.memory_space<vmem>>, vector<16x32xf32>
    %c0_1 = arith.constant 0 : index
    %c0_2 = arith.constant 0 : index
    %1 = vector.load %arg2[%c0_1, %c0_2] : memref<128x32xf32, #tpu.memory_space<vmem>>, vector<128x32xf32>
    %c0_3 = arith.constant 0 : index
    %c0_4 = arith.constant 0 : index
    %2 = vector.load %arg3[%c0_3, %c0_4] : memref<1x128xf32, #tpu.memory_space<vmem>>, vector<1x128xf32>
    %c0_5 = arith.constant 0 : index
    %c0_6 = arith.constant 0 : index
    %3 = vector.load %arg4[%c0_5, %c0_6] : memref<16x1xi32, #tpu.memory_space<vmem>>, vector<16x1xi32>
    %cst = arith.constant 1.000000e-01 : f32
    %4 = math.sqrt %cst : f32
    %cst_7 = arith.constant dense<0.000000e+00> : vector<16x128xf32>
    %5 = tpu.matmul %0, %1, %cst_7 {dimension_numbers = #tpu.dot_dimension_numbers<[1], [1], [0], [0], [0, 0, 1, 0], [], []>} : vector<16x32xf32>, vector<128x32xf32>, vector<16x128xf32> -> vector<16x128xf32>
    %6 = arith.mulf %0, %0 : vector<16x32xf32>
    %cst_8 = arith.constant dense<0.000000e+00> : vector<16xf32>
    %7 = vector.multi_reduction <add>, %6, %cst_8 [1] : vector<16x32xf32> to vector<16xf32>
    %8 = vector.shape_cast %7 : vector<16xf32> to vector<16x1xf32>
    %cst_9 = arith.constant 0.000000e+00 : f32
    %9 = vector.broadcast %cst_9 : f32 to vector<16x128xf32>
    %10 = arith.subf %9, %5 : vector<16x128xf32>
    %cst_10 = arith.constant 2.000000e+00 : f32
    %cst_11 = arith.constant 1.000000e-01 : f32
    %11 = arith.mulf %cst_10, %cst_11 : f32
    %12 = vector.broadcast %11 : f32 to vector<16x128xf32>
    %13 = arith.mulf %12, %10 : vector<16x128xf32>
    %cst_12 = arith.constant 1.000000e+00 : f32
    %14 = vector.broadcast %cst_12 : f32 to vector<16x128xf32>
    %15 = arith.addf %14, %13 : vector<16x128xf32>
    %cst_13 = arith.constant 1.000000e-01 : f32
    %16 = vector.broadcast %cst_13 : f32 to vector<1x128xf32>
    %17 = arith.mulf %16, %2 : vector<1x128xf32>
    %18 = vector.broadcast %17 : vector<1x128xf32> to vector<16x128xf32>
    %19 = arith.addf %15, %18 : vector<16x128xf32>
    %cst_14 = arith.constant 1.000000e-01 : f32
    %20 = vector.broadcast %cst_14 : f32 to vector<16x1xf32>
    %21 = arith.mulf %20, %8 : vector<16x1xf32>
    %cst_15 = arith.constant 1.000000e+00 : f32
    %22 = vector.broadcast %cst_15 : f32 to vector<16x1xf32>
    %23 = arith.subf %22, %21 : vector<16x1xf32>
    %24 = arith.mulf %19, %19 : vector<16x128xf32>
    %25 = vector.broadcast %8 : vector<16x1xf32> to vector<16x128xf32>
    %26 = arith.mulf %24, %25 : vector<16x128xf32>
    %27 = arith.mulf %23, %23 : vector<16x1xf32>
    %28 = vector.broadcast %27 : vector<16x1xf32> to vector<16x128xf32>
    %29 = vector.broadcast %2 : vector<1x128xf32> to vector<16x128xf32>
    %30 = arith.mulf %28, %29 : vector<16x128xf32>
    %31 = arith.addf %26, %30 : vector<16x128xf32>
    %cst_16 = arith.constant 2.000000e+00 : f32
    %32 = vector.broadcast %cst_16 : f32 to vector<16x128xf32>
    %33 = arith.mulf %32, %19 : vector<16x128xf32>
    %34 = vector.broadcast %23 : vector<16x1xf32> to vector<16x128xf32>
    %35 = arith.mulf %33, %34 : vector<16x128xf32>
    %36 = arith.mulf %35, %10 : vector<16x128xf32>
    %37 = arith.addf %31, %36 : vector<16x128xf32>
    %cst_17 = arith.constant 0.000000e+00 : f32
    %38 = vector.broadcast %cst_17 : f32 to vector<16x128xf32>
    %39 = arith.maximumf %37, %38 : vector<16x128xf32>
    %40 = math.sqrt %39 : vector<16x128xf32>
    %cst_18 = arith.constant 2.000000e+00 : f32
    %cst_19 = arith.constant 1.000000e-01 : f32
    %41 = arith.mulf %cst_18, %cst_19 : f32
    %42 = vector.broadcast %41 : f32 to vector<16x128xf32>
    %43 = arith.mulf %42, %10 : vector<16x128xf32>
    %cst_20 = arith.constant 1.000000e+00 : f32
    %44 = vector.broadcast %cst_20 : f32 to vector<16x128xf32>
    %45 = arith.addf %44, %43 : vector<16x128xf32>
    %cst_21 = arith.constant 1.000000e-01 : f32
    %cst_22 = arith.constant 1.000000e-01 : f32
    %46 = arith.mulf %cst_21, %cst_22 : f32
    %47 = vector.broadcast %46 : f32 to vector<16x1xf32>
    %48 = arith.mulf %47, %8 : vector<16x1xf32>
    %49 = vector.broadcast %48 : vector<16x1xf32> to vector<16x128xf32>
    %50 = vector.broadcast %2 : vector<1x128xf32> to vector<16x128xf32>
    %51 = arith.mulf %49, %50 : vector<16x128xf32>
    %52 = arith.addf %45, %51 : vector<16x128xf32>
    %cst_23 = arith.constant 9.99999974E-6 : f32
    %53 = vector.broadcast %cst_23 : f32 to vector<16x128xf32>
    %54 = arith.addf %52, %53 : vector<16x128xf32>
    %55 = arith.divf %40, %54 : vector<16x128xf32>
    %56 = vector.broadcast %4 : f32 to vector<16x128xf32>
    %57 = arith.mulf %56, %55 : vector<16x128xf32>
    %cst_24 = arith.constant -0.999989986 : f32
    %cst_25 = arith.constant 0.999989986 : f32
    %58 = vector.broadcast %cst_24 : f32 to vector<16x128xf32>
    %59 = arith.maximumf %58, %57 : vector<16x128xf32>
    %60 = vector.broadcast %cst_25 : f32 to vector<16x128xf32>
    %61 = arith.minimumf %60, %59 : vector<16x128xf32>
    %cst_26 = arith.constant 1.000000e+00 : f32
    %62 = arith.divf %cst_26, %4 : f32
    %cst_27 = arith.constant 1.000000e+00 : f32
    %63 = vector.broadcast %cst_27 : f32 to vector<16x128xf32>
    %64 = arith.addf %63, %61 : vector<16x128xf32>
    %cst_28 = arith.constant 1.000000e+00 : f32
    %65 = vector.broadcast %cst_28 : f32 to vector<16x128xf32>
    %66 = arith.subf %65, %61 : vector<16x128xf32>
    %67 = arith.divf %64, %66 : vector<16x128xf32>
    %68 = math.log %67 : vector<16x128xf32>
    %69 = vector.broadcast %62 : f32 to vector<16x128xf32>
    %70 = arith.mulf %69, %68 : vector<16x128xf32>
    %71 = tpu.iota {dimensions = array<i32: 1>} : vector<16x128xi32>
    %c8_i32 = arith.constant 8 : i32
    %72 = vector.broadcast %c8_i32 : i32 to vector<16x128xi32>
    %73 = arith.cmpi slt, %71, %72 : vector<16x128xi32>
    %cst_29 = arith.constant 0.000000e+00 : f32
    %74 = vector.broadcast %cst_29 : f32 to vector<16x128xf32>
    %75 = arith.subf %74, %70 : vector<16x128xf32>
    %cst_30 = arith.constant -1.000000e+30 : f32
    %76 = vector.broadcast %cst_30 : f32 to vector<16x128xf32>
    %77 = arith.select %73, %75, %76 : vector<16x128xi1>, vector<16x128xf32>
    %78 = vector.broadcast %3 : vector<16x1xi32> to vector<16x128xi32>
    %79 = arith.cmpi eq, %71, %78 : vector<16x128xi32>
    %cst_31 = arith.constant 0.0142857144 : f32
    %cst_32 = arith.constant 0.000000e+00 : f32
    %80 = vector.broadcast %cst_31 : f32 to vector<16x128xf32>
    %81 = vector.broadcast %cst_32 : f32 to vector<16x128xf32>
    %82 = arith.select %73, %80, %81 : vector<16x128xi1>, vector<16x128xf32>
    %cst_33 = arith.constant 0.899999976 : f32
    %83 = vector.broadcast %cst_33 : f32 to vector<16x128xf32>
    %84 = arith.select %79, %83, %82 : vector<16x128xi1>, vector<16x128xf32>
    %cst_34 = arith.constant dense<0xFF800000> : vector<16xf32>
    %85 = vector.multi_reduction <maximumf>, %77, %cst_34 [1] : vector<16x128xf32> to vector<16xf32>
    %86 = vector.shape_cast %85 : vector<16xf32> to vector<16x1xf32>
    %87 = vector.broadcast %86 : vector<16x1xf32> to vector<16x128xf32>
    %88 = arith.subf %77, %87 : vector<16x128xf32>
    %89 = math.exp %88 : vector<16x128xf32>
    %cst_35 = arith.constant dense<0.000000e+00> : vector<16xf32>
    %90 = vector.multi_reduction <add>, %89, %cst_35 [1] : vector<16x128xf32> to vector<16xf32>
    %91 = vector.shape_cast %90 : vector<16xf32> to vector<16x1xf32>
    %92 = math.log %91 : vector<16x1xf32>
    %93 = arith.addf %86, %92 : vector<16x1xf32>
    %cst_36 = arith.constant 0.000000e+00 : f32
    %94 = vector.broadcast %cst_36 : f32 to vector<16x128xf32>
    %95 = arith.subf %94, %84 : vector<16x128xf32>
    %96 = vector.broadcast %93 : vector<16x1xf32> to vector<16x128xf32>
    %97 = arith.subf %77, %96 : vector<16x128xf32>
    %98 = arith.mulf %95, %97 : vector<16x128xf32>
    %cst_37 = arith.constant 1.000000e+00 : f32
    %99 = vector.broadcast %cst_37 : f32 to vector<1x128xf32>
    %cst_38 = arith.constant dense<0.000000e+00> : vector<1x16xf32>
    %100 = tpu.matmul %99, %98, %cst_38 {dimension_numbers = #tpu.dot_dimension_numbers<[1], [1], [0], [0], [0, 0, 1, 0], [], []>} : vector<1x128xf32>, vector<16x128xf32>, vector<1x16xf32> -> vector<1x16xf32>
    %c0_39 = arith.constant 0 : index
    %c0_40 = arith.constant 0 : index
    %101 = vector.load %arg5[%c0_39, %c0_40] : memref<1x16xf32, #tpu.memory_space<vmem>>, vector<1x16xf32>
    tpu.vector_store %arg5[%c0_39, %c0_40], %100 {strides = array<i32>} : memref<1x16xf32, #tpu.memory_space<vmem>>, vector<1x16xf32>,
    return
  }
  func.func @transform_0(%arg0: i32) -> (i32, i32) {
    %c0_i32 = arith.constant 0 : i32
    %c0_i32_0 = arith.constant 0 : i32
    return %arg0, %c0_i32 : i32, i32
  }
  func.func @transform_1(%arg0: i32) -> (i32, i32) {
    %c0_i32 = arith.constant 0 : i32
    %c0_i32_0 = arith.constant 0 : i32
    %c0_i32_1 = arith.constant 0 : i32
    return %c0_i32, %c0_i32_0 : i32, i32
  }
  func.func @transform_2(%arg0: i32) -> (i32, i32) {
    %c0_i32 = arith.constant 0 : i32
    %c0_i32_0 = arith.constant 0 : i32
    %c0_i32_1 = arith.constant 0 : i32
    return %c0_i32, %c0_i32_0 : i32, i32
  }
  func.func @transform_3(%arg0: i32) -> (i32, i32) {
    %c0_i32 = arith.constant 0 : i32
    %c0_i32_0 = arith.constant 0 : i32
    return %arg0, %c0_i32 : i32, i32
  }
  func.func @transform_4(%arg0: i32) -> (i32, i32) {
    %c0_i32 = arith.constant 0 : i32
    %c0_i32_0 = arith.constant 0 : i32
    return %c0_i32, %arg0 : i32, i32
  }
}

</mosaic_0001>

<bundles_post_ra>
// kernel: tpu_custom_call.1
= control target key start
LH: loop header
LB: loop body
LE: loop exit
PB: predicated region body
PF: predicated region fallthrough
CT: control target
= control target key end

     0   :  { %vm39_vm0 = vcmask 261120   ;;  %s671_s0 = inlined_call_operand.vmem [shape: f32[16,32], index: 0, kind: input, shape index: {}]   ;;  %s672_s1 = inlined_call_operand.vmem [shape: f32[128,32], index: 1, kind: input, shape index: {}]   ;;  %s673_s2 = inlined_call_operand.vmem [shape: f32[1,128], index: 2, kind: input, shape index: {}]   ;;  %s674_s3 = inlined_call_operand.vmem [shape: s32[16,1], index: 3, kind: input, shape index: {}]   ;;  %s675_s4 = inlined_call_operand.hbm [shape: f32[1,16], index: 4, kind: output, shape index: {}]  }
   0x1   :  { %v35_v0 = vld [vmem:[%s672_s1 + $0x78] sm:$0xff]  ;;  %v34_v1 = vld [vmem:[%s672_s1 + $0x70] sm:$0xff]  ;;  %v33_v2 = vld [vmem:[%s672_s1 + $0x68] sm:$0xff] }
   0x2   :  { %439 = vmatprep.subr.msk.mxu0 %vm39_vm0, %v35_v0  ;;  %v18_v3 = vld [vmem:[%s671_s0] sm:$0xff]  ;;  %v19_v4 = vld [vmem:[%s671_s0 + $0x8] sm:$0xff] }
   0x3   :  { %440 = vmatpush3.xpose.msk.msra.mxu0 %vm39_vm0, %v35_v0  ;;  %471 = vmatprep.mubr.msk.f32.mxu0 %vm39_vm0, %v18_v3  ;;  %v169_v5 = vmul.f32 %v18_v3, %v18_v3  ;;  %v170_v6 = vmul.f32 %v19_v4, %v19_v4 }
   0x4   :  { %441 = vmatprep.subr.msk.mxu0 %vm39_vm0, %v34_v1 }
   0x7   :  { %442 = vmatpush3.xpose.msk.msra.mxu0 %vm39_vm0, %v34_v1 }
   0x8   :  { %9 = vsyncpa [#allocation3], 0  ;;  %443 = vmatprep.subr.msk.mxu0 %vm39_vm0, %v33_v2  ;;  %v32_v7 = vld [vmem:[%s672_s1 + $0x60] sm:$0xff]  ;;  %v174_v8 = vsel %vm39_vm0, %v170_v6, 0.0  ;;  %v171_v9 = vsel %vm39_vm0, %v169_v5, 0.0  ;;  %v31_v10 = vld [vmem:[%s672_s1 + $0x58] sm:$0xff]  ;;  %v185_v22 = vlaneseq }
   0x9   :  { %175 = vadd.xlane.f32.xlu0 %v174_v8  ;;  %v30_v11 = vld [vmem:[%s672_s1 + $0x50] sm:$0xff]  ;;  %v29_v12 = vld [vmem:[%s672_s1 + $0x48] sm:$0xff]  ;;  %v28_v13 = vld [vmem:[%s672_s1 + $0x40] sm:$0xff]  ;;  %vm536_vm6 = vmmov 0   ;;  %vm382_vm9 = vcmask 122880  }
   0xa   :  { %v27_v14 = vld [vmem:[%s672_s1 + $0x38] sm:$0xff]  ;;  %v26_v15 = vld [vmem:[%s672_s1 + $0x30] sm:$0xff]  ;;  %v25_v16 = vld [vmem:[%s672_s1 + $0x28] sm:$0xff]  ;;  %v186_v25 = vshrl.u32 %v185_v22, 7 }
   0xb   :  { %444 = vmatpush3.xpose.msk.msra.mxu0 %vm39_vm0, %v33_v2  ;;  %v24_v17 = vld [vmem:[%s672_s1 + $0x20] sm:$0xff]  ;;  %v23_v18 = vld [vmem:[%s672_s1 + $0x18] sm:$0xff]  ;;  %v22_v19 = vld [vmem:[%s672_s1 + $0x10] sm:$0xff] }
   0xc   :  { %445 = vmatprep.subr.msk.mxu0 %vm39_vm0, %v32_v7  ;;  %v21_v20 = vld [vmem:[%s672_s1 + $0x8] sm:$0xff]  ;;  %v20_v21 = vld [vmem:[%s672_s1] sm:$0xff]  ;;  %v187_v31 = vsub.s32 0, %v186_v25 }
   0xd   :  { %172 = vadd.xlane.f32.xlu0 %v171_v9  ;;  %v36_v24 = vld [vmem:[%s673_s2] sm:$0x1] }
   0xe   :  { %v183_v27 = vmul.f32 0.1, %v36_v24  ;;  %v206_v42 = vrot.slane %v36_v24, %v187_v31 }
   0xf   :  { %446 = vmatpush3.xpose.msk.msra.mxu0 %vm39_vm0, %v32_v7 }
  0x10   :  { %447 = vmatprep.subr.msk.mxu0 %vm39_vm0, %v31_v10  ;;  %v188_v36 = vrot.slane %v183_v27, %v187_v31 }
  0x13   :  { %448 = vmatpush3.xpose.msk.msra.mxu0 %vm39_vm0, %v31_v10 }
  0x14   :  { %449 = vmatprep.subr.msk.mxu0 %vm39_vm0, %v30_v11 }
  0x17   :  { %450 = vmatpush3.xpose.msk.msra.mxu0 %vm39_vm0, %v30_v11 }
  0x18   :  { %451 = vmatprep.subr.msk.mxu0 %vm39_vm0, %v29_v12 }
  0x1b   :  { %452 = vmatpush3.xpose.msk.msra.mxu0 %vm39_vm0, %v29_v12 }
  0x1c   :  { %453 = vmatprep.subr.msk.mxu0 %vm39_vm0, %v28_v13 }
  0x1f   :  { %454 = vmatpush3.xpose.msk.msra.mxu0 %vm39_vm0, %v28_v13 }
  0x20   :  { %455 = vmatprep.subr.msk.mxu0 %vm39_vm0, %v27_v14 }
  0x23   :  { %456 = vmatpush3.xpose.msk.msra.mxu0 %vm39_vm0, %v27_v14 }
  0x24   :  { %457 = vmatprep.subr.msk.mxu0 %vm39_vm0, %v26_v15 }
  0x27   :  { %458 = vmatpush3.xpose.msk.msra.mxu0 %vm39_vm0, %v26_v15 }
  0x28   :  { %459 = vmatprep.subr.msk.mxu0 %vm39_vm0, %v25_v16 }
  0x2b   :  { %460 = vmatpush3.xpose.msk.msra.mxu0 %vm39_vm0, %v25_v16 }
  0x2c   :  { %461 = vmatprep.subr.msk.mxu0 %vm39_vm0, %v24_v17 }
  0x2f   :  { %462 = vmatpush3.xpose.msk.msra.mxu0 %vm39_vm0, %v24_v17 }
  0x30   :  { %463 = vmatprep.subr.msk.mxu0 %vm39_vm0, %v23_v18 }
  0x33   :  { %464 = vmatpush3.xpose.msk.msra.mxu0 %vm39_vm0, %v23_v18 }
  0x34   :  { %465 = vmatprep.subr.msk.mxu0 %vm39_vm0, %v22_v19 }
  0x37   :  { %466 = vmatpush3.xpose.msk.msra.mxu0 %vm39_vm0, %v22_v19 }
  0x38   :  { %467 = vmatprep.subr.msk.mxu0 %vm39_vm0, %v21_v20 }
  0x3b   :  { %468 = vmatpush3.xpose.msk.msra.mxu0 %vm39_vm0, %v21_v20 }
  0x3c   :  { %469 = vmatprep.subr.msk.mxu0 %vm39_vm0, %v20_v21 }
  0x3f   :  { %470 = vmatpush3.xpose.msk.msra.mxu0 %vm39_vm0, %v20_v21 }
  0x42   :  { %472 = vmatmul.mubr.msk.f32.vlgmr.msra.gmra.mxu0 %vm39_vm0, %v19_v4 }
  0x92   :  { %v176_v23 = vpop.xlane.xlu0 %175 }
  0x93   :  { %v193_v26 = vmul.f32 0.1, %v176_v23  ;;  %v237_v43 = vmul.f32 0.010000001, %v176_v23 }
  0x95   :  { %v195_v32 = vsub.f32 1.0, %v193_v26  ;;  %v239_v52 = vmul.f32 %v237_v43, %v206_v42 }
  0x96   :  { %v173_v28 = vpop.xlane.xlu0 %172 }
  0x97   :  { %v192_v30 = vmul.f32 0.1, %v173_v28  ;;  %v201_v39 = vmul.f32 %v195_v32, %v195_v32  ;;  %v236_v51 = vmul.f32 0.010000001, %v173_v28 }
  0x99   :  { %v194_v38 = vsub.f32 1.0, %v192_v30  ;;  %v209_v47 = vmul.f32 %v206_v42, %v201_v39  ;;  %v238_v62 = vmul.f32 %v236_v51, %v206_v42 }
  0x9b   :  { %v200_v46 = vmul.f32 %v194_v38, %v194_v38 }
  0x9d   :  { %v208_v57 = vmul.f32 %v206_v42, %v200_v46 }
 0x102   :  { %v473_v29 = vpop.f32.mrf.mxu0 }
 0x103   :  { %v178_v33 = vsub.f32 0.0, %v473_v29 }
 0x104   :  { %v160_v34 = vpop.f32.mrf.mxu0 }
 0x105   :  { %v180_v35 = vmul.f32 0.2, %v178_v33  ;;  %v177_v37 = vsub.f32 0.0, %v160_v34 }
 0x107   :  { %v182_v40 = vadd.f32 1.0, %v180_v35  ;;  %v179_v41 = vmul.f32 0.2, %v177_v37 }
 0x109   :  { %v191_v44 = vadd.f32 %v188_v36, %v182_v40  ;;  %v181_v45 = vadd.f32 1.0, %v179_v41  ;;  %v241_v0 = vadd.f32 %v239_v52, %v182_v40 }
 0x10b   :  { %v197_v48 = vmul.f32 %v191_v44, %v191_v44  ;;  %v213_v49 = vmul.f32 2.0, %v191_v44  ;;  %v190_v50 = vadd.f32 %v188_v36, %v181_v45  ;;  %v240_v5 = vadd.f32 %v238_v62, %v181_v45 }
 0x10c   :  { %v243_v6 = vadd.f32 1e-05, %v241_v0 }
 0x10d   :  { %v199_v53 = vmul.f32 %v197_v48, %v176_v23  ;;  %v215_v54 = vmul.f32 %v213_v49, %v195_v32  ;;  %v212_v55 = vmul.f32 2.0, %v190_v50  ;;  %v196_v56 = vmul.f32 %v190_v50, %v190_v50 }
 0x10e   :  { %v242_v8 = vadd.f32 1e-05, %v240_v5 }
 0x10f   :  { %v211_v58 = vadd.f32 %v209_v47, %v199_v53  ;;  %v217_v59 = vmul.f32 %v215_v54, %v178_v33  ;;  %v214_v60 = vmul.f32 %v212_v55, %v194_v38  ;;  %v198_v61 = vmul.f32 %v196_v56, %v173_v28  ;;  %v37_v55 = vld [vmem:[%s674_s3] sm:$0xff]  ;;  %v38_v56 = vld [vmem:[%s674_s3 + $0x8] sm:$0xff]  ;;  %s538_s3 = smov [#allocation2]  }
 0x110   :  { %v534_v47 = vmov 0   ;;  %s390_s27 = sshll.u32 %s538_s3, 4  ;;  %s391_s27 = int_to_ptr.vmem [resolvable:$true] %s390_s27 }
 0x111   :  { %v219_v63 = vadd.f32 %v217_v59, %v211_v58  ;;  %v216_v1 = vmul.f32 %v214_v60, %v177_v37  ;;  %v210_v2 = vadd.f32 %v208_v57, %v198_v61  ;;  %v269_v37 = vand.u32 127, %v185_v22  ;;  %486 = vset.pattern.permute.xlu0 %v534_v47  ;;  %487 = vset.pattern.permute.xlu1 %v534_v47  ;;  %s512_s28 = scalar_lea.vmem %s391_s27, 16  ;;  %s516_s29 = scalar_lea.vmem %s391_s27, 32 }
 0x112   :  { %v535_v57 = vmov 0.0   ;;  %p513_p0 = scmp.ne.s32.totalorder %s391_s27, %s512_s28  ;;  %p517_p1 = scmp.lt.s32.totalorder %s391_s27, %s391_s27 }
 0x113   :  { %v221_v3 = vmax.f32 %v219_v63, 0.0  ;;  %v218_v4 = vadd.f32 %v216_v1, %v210_v2  ;;  %vm270_vm5 = vcmp.lt.s32.totalorder %v269_v37, 8  ;;  %474 = vmatprep.subr.mxu1 %v535_v57  ;;  %478 = vmatprep.mubr.msk.f32.mxu1 %vm536_vm6, %v535_v57  ;;  %p518_p2 = scmp.lt.s32.totalorder %s516_s29, %s512_s28 }
 0x114   :  { %v283_v61 = vsel %vm270_vm5, 0.014285714, %v535_v57 }
 0x115   :  { %488 = vrsqrt.f32 %v221_v3  ;;  %v220_v7 = vmax.f32 %v218_v4, 0.0  ;;  %vm231_vm1 = vcmp.eq.f32.partialorder %v221_v3, inf  ;;  %v234_v11 = vand.u32 2147483648, %v221_v3  ;;  %p519_p3 = por %p518_p2, %p517_p1 }
 0x116   :  { %vm233_vm2 = vcmp.eq.f32.partialorder %v221_v3, 0.0 }
 0x117   :  { %490 = vrsqrt.f32 %v220_v7  ;;  %vm224_vm3 = vcmp.eq.f32.partialorder %v220_v7, inf  ;;  %v227_v18 = vand.u32 2147483648, %v220_v7  ;;  %vm226_vm4 = vcmp.eq.f32.partialorder %v220_v7, 0.0  ;;  %p520_p4 = pnand %p519_p3, %p513_p0 }
 0x118   :  { %492 = vrcp.f32 %v243_v6 }
 0x119   :  { %494 = vrcp.f32 %v242_v8 }
 0x122   :  { %v489_v9 = vpop.eup %488 }
 0x123   :  { %v230_v10 = vmul.f32 %v489_v9, %v221_v3 }
 0x124   :  { %v491_v12 = vpop.eup %490 }
 0x125   :  { %v232_v13 = vsel %vm231_vm1, %v221_v3, %v230_v10  ;;  %v493_v14 = vpop.eup %492  ;;  %v223_v16 = vmul.f32 %v491_v12, %v220_v7 }
 0x126   :  { %v235_v15 = vsel %vm233_vm2, %v234_v11, %v232_v13  ;;  %v495_v20 = vpop.eup %494  ;;  %v537_v13 = vmov 1.0  }
 0x127   :  { %v247_v17 = vmul.f32 %v493_v14, %v235_v15  ;;  %v225_v19 = vsel %vm224_vm3, %v220_v7, %v223_v16 }
 0x128   :  { %v228_v23 = vsel %vm226_vm4, %v227_v18, %v225_v19 }
 0x129   :  { %v249_v21 = vmul.f32 0.31622776, %v247_v17  ;;  %v245_v24 = vmul.f32 %v495_v20, %v228_v23 }
 0x12b   :  { %v417_v25 = vclamps-f32 %v249_v21, 0.99999  ;;  %v248_v26 = vmul.f32 0.31622776, %v245_v24 }
 0x12d   :  { %v257_v27 = vsub.f32 1.0, %v417_v25  ;;  %v416_v28 = vclamps-f32 %v248_v26, 0.99999  ;;  %v255_v30 = vadd.f32 1.0, %v417_v25 }
 0x12f   :  { %496 = vrcp.f32 %v257_v27  ;;  %v256_v29 = vsub.f32 1.0, %v416_v28  ;;  %v254_v33 = vadd.f32 1.0, %v416_v28 }
 0x131   :  { %498 = vrcp.f32 %v256_v29 }
 0x13c   :  { %v497_v31 = vpop.eup %496 }
 0x13d   :  { %v261_v32 = vmul.f32 %v497_v31, %v255_v30 }
 0x13e   :  { %v499_v34 = vpop.eup %498 }
 0x13f   :  { %500 = vlog2.f32 %v261_v32  ;;  %v259_v35 = vmul.f32 %v499_v34, %v254_v33 }
 0x141   :  { %502 = vlog2.f32 %v259_v35 }
 0x14c   :  { %v501_v36 = vpop.eup %500 }
 0x14d   :  { %v265_v38 = vmul.f32 0.6931472, %v501_v36 }
 0x14e   :  { %v503_v39 = vpop.eup %502 }
 0x14f   :  { %v267_v40 = vmul.f32 3.1622777, %v265_v38  ;;  %v263_v41 = vmul.f32 0.6931472, %v503_v39 }
 0x151   :  { %v272_v42 = vsub.f32 0.0, %v267_v40  ;;  %v266_v43 = vmul.f32 3.1622777, %v263_v41 }
 0x153   :  { %v274_v44 = vsel %vm270_vm5, %v272_v42, -1e+30  ;;  %v271_v45 = vsub.f32 0.0, %v266_v43 }
 0x154   :  { %288 = vmax.xlane.f32.xlu1 %v274_v44 }
 0x155   :  { %v273_v46 = vsel %vm270_vm5, %v271_v45, -1e+30 }
 0x158   :  { %286 = vmax.xlane.f32.xlu1 %v273_v46 }
 0x1dd   :  { %v289_v48 = vpop.xlane.xlu1 %288 }
 0x1de   :  { %v291_v49 = vsub.f32 %v274_v44, %v289_v48 }
 0x1e0   :  { %v294_v22 = vmul.f32 1.442695, %v291_v49 }
 0x1e1   :  { %v287_v50 = vpop.xlane.xlu1 %286 }
 0x1e2   :  { %504 = vpow2.f32 %v294_v22  ;;  %v290_v51 = vsub.f32 %v273_v46, %v287_v50 }
 0x1e4   :  { %v292_v52 = vmul.f32 1.442695, %v290_v51 }
 0x1e6   :  { %506 = vpow2.f32 %v292_v52 }
 0x1ef   :  { %v505_v53 = vpop.eup %504 }
 0x1f0   :  { %298 = vadd.xlane.f32.xlu0 %v505_v53 }
 0x1f3   :  { %v507_v54 = vpop.eup %506 }
 0x1f4   :  { %296 = vadd.xlane.f32.xlu1 %v507_v54 }
 0x205   :  { %276 = vperm.xlu1 %487, %v37_v55  }
 0x206   :  { %279 = vperm.xlu0 %486, %v38_v56  }
 0x279   :  { %v299_v58 = vpop.xlane.xlu0 %298 }
 0x27a   :  { %508 = vlog2.f32 %v299_v58 }
 0x27d   :  { %v297_v59 = vpop.xlane.xlu1 %296 }
 0x27e   :  { %510 = vlog2.f32 %v297_v59 }
 0x281   :  { %v280_v60 = vpop.permute.xlu0 %279  ;;  %v277_v62 = vpop.permute.xlu1 %276 }
 0x282   :  { %vm282_vm7 = vcmp.eq.s32.totalorder %v269_v37, %v280_v60  ;;  %vm281_vm8 = vcmp.eq.s32.totalorder %v269_v37, %v277_v62 }
 0x283   :  { %v285_v0 = vsel %vm282_vm7, 0.9, %v283_v61  ;;  %v284_v5 = vsel %vm281_vm8, 0.9, %v283_v61 }
 0x284   :  { %v307_v2 = vsub.f32 0.0, %v285_v0  ;;  %v306_v9 = vsub.f32 0.0, %v284_v5 }
 0x287   :  { %v509_v63 = vpop.eup %508 }
 0x288   :  { %v303_v1 = vmul.f32 0.6931472, %v509_v63 }
 0x28a   :  { %v305_v3 = vadd.f32 %v303_v1, %v289_v48 }
 0x28b   :  { %v511_v4 = vpop.eup %510 }
 0x28c   :  { %v301_v6 = vmul.f32 0.6931472, %v511_v4  ;;  %v309_v7 = vsub.f32 %v274_v44, %v305_v3 }
 0x28e   :  { %v304_v8 = vadd.f32 %v301_v6, %v287_v50  ;;  %v311_v10 = vmul.f32 %v309_v7, %v307_v2 }
 0x290   :  { %v308_v11 = vsub.f32 %v273_v46, %v304_v8  ;;  %475 = vmatpush3.xpose.msra.mxu1 %v311_v10 }
 0x291   :  { %476 = vmatprep.subr.mxu1 %v535_v57 }
 0x292   :  { %v310_v12 = vmul.f32 %v308_v11, %v306_v9 }
 0x294   :  { %477 = vmatpush3.xpose.msra.mxu1 %v310_v12 }
 0x297   :  { %479 = vmatmul.mubr.f32.vlgmr.msra.gmra.mxu1 %v537_v13 }
 0x357   :  { %v378_v14 = vpop.f32.mrf.mxu1 }
 0x358   :  { %383 = vst.msk [vmem:[#allocation2] sm:$0x1] %vm382_vm9, %v378_v14 }
 0x359   :  { %v480_v15 = vpop.f32.mrf.mxu1 }
 0x35a   :  { %523 = shalt.err (!%p520_p4)
}
 0x35b   :  { %393 = dma.vmem_to_hbm [thread:$0]  %s391_s27, 16, %s675_s4, [#allocation3]  }
 0x35c   :  { %532 = dma.done.wait [#allocation3], 16  }
 0x35d   :  { %533 = vsyncadd [#allocation3], 4294967280 }
 0x35e   :  { %397 = vsyncpa [#allocation3], 1 }

</bundles_post_ra>
